<compile_context>
chip_gen: v7x
topology: tpu7x:2x2x1
jax: 0.10.0
libtpu: 0.0.40
codegen_flags: <defaults>
</compile_context>

<pallas_src>
import jax
import jax.numpy as jnp
from jax.experimental import pallas as pl
from jax.experimental.pallas import tpu as pltpu

_N1, _N2 = 256, 128                 # hidden widths of the critic MLP
_MAX_K = 1024                       # largest contraction block kept fully resident
_VMEM_BUDGET = 36 * 1024 * 1024     # working-set target (safe on v7x's 64 MiB)
_VMEM_LIMIT = 48 * 1024 * 1024      # scoped VMEM limit handed to Mosaic


def _round_up(n, m):
    return ((n + m - 1) // m) * m


def _epilogue(h1_f32, b1, w2, b2, w3, b3_scalar, o_ref):
    """Layers 2 and 3 given the f32 pre-activation of layer 1."""
    h1 = jnp.maximum(h1_f32 + b1, 0.0)                              # f32 VPU
    h2 = jnp.dot(h1.astype(jnp.bfloat16), w2,
                 preferred_element_type=jnp.float32)                # MXU
    h2 = jnp.maximum(h2 + b2, 0.0)                                  # f32 VPU
    # Layer 3: VPU multiply + XLU lane-reduce; avoids an N=1 MXU matmul.
    out = jnp.sum(h2 * w3, axis=-1, keepdims=True) + b3_scalar
    o_ref[...] = out.astype(o_ref.dtype)


def _critic_kernel(x_ref, w1_ref, b1_ref, w2_ref, b2_ref, w3_ref, b3_ref, o_ref):
    """Single-K-block kernel: the whole contraction dim D fits one VMEM block."""
    # In-kernel bf16 cast of x (f32 in HBM/VMEM) -> no wrapper-side cast pass.
    h1 = jnp.dot(x_ref[...].astype(jnp.bfloat16), w1_ref[...],
                 preferred_element_type=jnp.float32)
    _epilogue(h1, b1_ref[...], w2_ref[...], b2_ref[...], w3_ref[...],
              b3_ref[0, 0], o_ref)


def _critic_kernel_ktiled(x_ref, w1_ref, b1_ref, w2_ref, b2_ref, w3_ref, b3_ref,
                          o_ref, acc_ref):
    """K-tiled kernel for large input_dim: accumulate layer 1 over K blocks."""
    k = pl.program_id(1)

    @pl.when(k == 0)
    def _():
        acc_ref[...] = jnp.zeros_like(acc_ref)

    acc_ref[...] += jnp.dot(x_ref[...].astype(jnp.bfloat16), w1_ref[...],
                            preferred_element_type=jnp.float32)

    @pl.when(k == pl.num_programs(1) - 1)
    def _():
        _epilogue(acc_ref[...], b1_ref[...], w2_ref[...], b2_ref[...],
                  w3_ref[...], b3_ref[0, 0], o_ref)


def critic_forward(x, params, *, block_rows=4096):
    """Forward pass of the Critic.

    x: (B, input_dim) float32.
    params: dict with
      w1 (input_dim, 256), w2 (256, 128)  -- stored (in, out), i.e. transposed
      relative to PyTorch's (out, in) layout, so the kernel computes x @ W;
      w3 (1, 128) row vector; b1 (1, 256); b2 (1, 128); b3 (1, 1).
    """
    B, D = x.shape

    # ---- contraction (K) tiling: single block for small D, 1024-chunks else ----
    if D <= _MAX_K:
        tk, Dp = D, D
    else:
        tk = _MAX_K
        Dp = _round_up(D, tk)

    # ---- VMEM-budgeted, D-aware row-tile selection --------------------------
    # Per-row: double-buffered f32 x tile, f32 layer-1 acc/h1, bf16 h1, f32 h2
    # (x2 temps), double-buffered f32 output.
    bytes_per_row = 2 * tk * 4 + _N1 * 4 + _N1 * 2 + 2 * _N2 * 4 + 64
    # Resident weights (double-buffered bf16 blocks) + misc slack.
    fixed_bytes = 2 * tk * _N1 * 2 + 2 * _N1 * _N2 * 2 + (2 << 20)
    tb_cap = max(16, ((_VMEM_BUDGET - fixed_bytes) // bytes_per_row) // 16 * 16)

    tb = max(16, min(block_rows, tb_cap) // 16 * 16)
    # Guarantee >=2 row tiles when the batch allows (feeds both v7x TCs).
    two_way = _round_up(max((B + 1) // 2, 1), 16)
    tb = min(tb, two_way)
    Bp = _round_up(B, tb)

    if Bp != B or Dp != D:
        x = jnp.pad(x, ((0, Bp - B), (0, Dp - D)))

    # Weights to bf16 for the MXU (tiny arrays; the big x stays f32 end-to-end).
    w1 = params["w1"].astype(jnp.bfloat16)
    if Dp != D:
        w1 = jnp.pad(w1, ((0, Dp - D), (0, 0)))
    w2 = params["w2"].astype(jnp.bfloat16)
    b1 = params["b1"].astype(jnp.float32).reshape(1, _N1)
    b2 = params["b2"].astype(jnp.float32).reshape(1, _N2)
    w3 = params["w3"].astype(jnp.float32).reshape(1, _N2)
    b3 = params["b3"].astype(jnp.float32).reshape(1, 1)

    if Dp == tk:
        # Single K block: simple kernel, 1-D grid over row tiles.
        grid = (Bp // tb,)
        kernel = _critic_kernel
        in_specs = [
            pl.BlockSpec((tb, Dp), lambda i: (i, 0)),          # x: row-tiled
            pl.BlockSpec((Dp, _N1), lambda i: (0, 0)),         # w1 resident
            pl.BlockSpec((1, _N1), lambda i: (0, 0)),          # b1 resident
            pl.BlockSpec((_N1, _N2), lambda i: (0, 0)),        # w2 resident
            pl.BlockSpec((1, _N2), lambda i: (0, 0)),          # b2 resident
            pl.BlockSpec((1, _N2), lambda i: (0, 0)),          # w3 resident
            pl.BlockSpec((1, 1), lambda i: (0, 0),
                         memory_space=pltpu.MemorySpace.SMEM),  # b3 scalar
        ]
        out_specs = pl.BlockSpec((tb, 1), lambda i: (i, 0))
        scratch = []
        dims = ("parallel",)
    else:
        # K-tiled fallback for large input_dim (reduction axis last, arbitrary).
        grid = (Bp // tb, Dp // tk)
        kernel = _critic_kernel_ktiled
        in_specs = [
            pl.BlockSpec((tb, tk), lambda i, k: (i, k)),       # x: (row, K) tiled
            pl.BlockSpec((tk, _N1), lambda i, k: (k, 0)),      # w1: K-tiled
            pl.BlockSpec((1, _N1), lambda i, k: (0, 0)),
            pl.BlockSpec((_N1, _N2), lambda i, k: (0, 0)),
            pl.BlockSpec((1, _N2), lambda i, k: (0, 0)),
            pl.BlockSpec((1, _N2), lambda i, k: (0, 0)),
            pl.BlockSpec((1, 1), lambda i, k: (0, 0),
                         memory_space=pltpu.MemorySpace.SMEM),
        ]
        out_specs = pl.BlockSpec((tb, 1), lambda i, k: (i, 0))
        scratch = [pltpu.VMEM((tb, _N1), jnp.float32)]         # layer-1 accumulator
        dims = ("parallel", "arbitrary")

    out = pl.pallas_call(
        kernel,
        out_shape=jax.ShapeDtypeStruct((Bp, 1), jnp.float32),
        grid=grid,
        in_specs=in_specs,
        out_specs=out_specs,
        scratch_shapes=scratch,
        compiler_params=pltpu.CompilerParams(
            dimension_semantics=dims,
            vmem_limit_bytes=_VMEM_LIMIT,
        ),
    )(x, w1, b1, w2, b2, w3, b3)

    return out[:B]


def init_params(key, input_dim):
    """PyTorch nn.Linear default init: U(-1/sqrt(fan_in), +1/sqrt(fan_in))."""
    dims = [(input_dim, _N1), (_N1, _N2), (_N2, 1)]
    keys = jax.random.split(key, 6)
    params = {}
    for i, (fan_in, fan_out) in enumerate(dims):
        bound = 1.0 / (fan_in ** 0.5)
        params[f"w{i+1}"] = jax.random.uniform(
            keys[2 * i], (fan_in, fan_out), jnp.float32, -bound, bound)
        params[f"b{i+1}"] = jax.random.uniform(
            keys[2 * i + 1], (1, fan_out), jnp.float32, -bound, bound)
    # Kernel consumes w3 as a (1, 128) row (out x in), like PyTorch stores it.
    params["w3"] = params["w3"].reshape(1, _N2)
    return params


def critic_ref(x, params):
    """Pure-JAX f32 reference of the Critic forward pass."""
    h = jnp.maximum(x @ params["w1"] + params["b1"], 0.0)
    h = jnp.maximum(h @ params["w2"] + params["b2"], 0.0)
    return h @ params["w3"].T + params["b3"]


if __name__ == "__main__":
    key = jax.random.PRNGKey(0)
    k_x, k_x2, k_x3, k_p, k_p3 = jax.random.split(key, 5)

    input_dim = 32
    params = init_params(k_p, input_dim)

    # Small demo batch (single row tile after padding to 16 rows).
    x = jax.random.normal(k_x, (8, input_dim), dtype=jnp.float32)
    out = jax.block_until_ready(critic_forward(x, params))
    ref = critic_ref(x, params)
    assert out.shape == (8, 1), out.shape
    # bf16 matmul operands vs f32 reference -> loosened tolerance.
    assert jnp.allclose(out, ref, atol=2e-2, rtol=2e-2), float(
        jnp.max(jnp.abs(out - ref)))

    # Multi-tile path: non-divisible batch exercises padding + grid >= 2 with
    # VMEM-resident weights across grid steps (two-TC split on v7x).
    x2 = jax.random.normal(k_x2, (20, input_dim), dtype=jnp.float32)
    out2 = jax.block_until_ready(critic_forward(x2, params))
    ref2 = critic_ref(x2, params)
    assert out2.shape == (20, 1), out2.shape
    assert jnp.allclose(out2, ref2, atol=2e-2, rtol=2e-2), float(
        jnp.max(jnp.abs(out2 - ref2)))

    # Large-input_dim path: exercises the K-tiled kernel (2 K blocks of 1024)
    # with the f32 VMEM accumulator and the 2-D grid.
    big_dim = 2048
    params3 = init_params(k_p3, big_dim)
    x3 = jax.random.normal(k_x3, (32, big_dim), dtype=jnp.float32)
    out3 = jax.block_until_ready(critic_forward(x3, params3))
    ref3 = critic_ref(x3, params3)
    assert out3.shape == (32, 1), out3.shape
    assert jnp.allclose(out3, ref3, atol=5e-2, rtol=5e-2), float(
        jnp.max(jnp.abs(out3 - ref3)))

    print("KERNEL_OK")
</pallas_src>

<mosaic_0001>
module attributes {stable_mosaic.version = 11 : i64} {
  func.func @_critic_kernel(%arg0: i32, %arg1: memref<16x32xf32, #tpu.memory_space<vmem>>, %arg2: memref<32x256xbf16, #tpu.memory_space<vmem>>, %arg3: memref<1x256xf32, #tpu.memory_space<vmem>>, %arg4: memref<256x128xbf16, #tpu.memory_space<vmem>>, %arg5: memref<1x128xf32, #tpu.memory_space<vmem>>, %arg6: memref<1x128xf32, #tpu.memory_space<vmem>>, %arg7: memref<1x1xf32, #tpu.memory_space<smem>>, %arg8: memref<16x1xf32, #tpu.memory_space<vmem>>) attributes {dimension_semantics = [#tpu.dimension_semantics<parallel>], iteration_bounds = array<i64: 1>, scalar_prefetch = 0 : i64, scratch_operands = 0 : i64, tpu.core_type = #tpu.core_type<tc>, window_params = [{transform_indices = @transform_0, window_bounds = array<i64: 16, 32>}, {pipeline_mode = #tpu.pipeline_mode<synchronous>, transform_indices = @transform_1, window_bounds = array<i64: 32, 256>}, {pipeline_mode = #tpu.pipeline_mode<synchronous>, transform_indices = @transform_2, window_bounds = array<i64: 1, 256>}, {pipeline_mode = #tpu.pipeline_mode<synchronous>, transform_indices = @transform_3, window_bounds = array<i64: 256, 128>}, {pipeline_mode = #tpu.pipeline_mode<synchronous>, transform_indices = @transform_4, window_bounds = array<i64: 1, 128>}, {pipeline_mode = #tpu.pipeline_mode<synchronous>, transform_indices = @transform_5, window_bounds = array<i64: 1, 128>}, {transform_indices = @transform_6, window_bounds = array<i64: 1, 1>}, {transform_indices = @transform_7, window_bounds = array<i64: 16, 1>}]} {
    %c0 = arith.constant 0 : index
    %c0_0 = arith.constant 0 : index
    %0 = vector.load %arg1[%c0, %c0_0] : memref<16x32xf32, #tpu.memory_space<vmem>>, vector<16x32xf32>
    %1 = arith.truncf %0 : vector<16x32xf32> to vector<16x32xbf16>
    %c0_1 = arith.constant 0 : index
    %c0_2 = arith.constant 0 : index
    %2 = vector.load %arg2[%c0_1, %c0_2] : memref<32x256xbf16, #tpu.memory_space<vmem>>, vector<32x256xbf16>
    %cst = arith.constant dense<0.000000e+00> : vector<16x256xf32>
    %3 = tpu.matmul %1, %2, %cst {dimension_numbers = #tpu.dot_dimension_numbers<[1], [0], [0], [1], [0, 0, 1, 1], [], []>} : vector<16x32xbf16>, vector<32x256xbf16>, vector<16x256xf32> -> vector<16x256xf32>
    %c0_3 = arith.constant 0 : index
    %c0_4 = arith.constant 0 : index
    %4 = vector.load %arg3[%c0_3, %c0_4] : memref<1x256xf32, #tpu.memory_space<vmem>>, vector<1x256xf32>
    %c0_5 = arith.constant 0 : index
    %c0_6 = arith.constant 0 : index
    %5 = vector.load %arg4[%c0_5, %c0_6] : memref<256x128xbf16, #tpu.memory_space<vmem>>, vector<256x128xbf16>
    %c0_7 = arith.constant 0 : index
    %c0_8 = arith.constant 0 : index
    %6 = vector.load %arg5[%c0_7, %c0_8] : memref<1x128xf32, #tpu.memory_space<vmem>>, vector<1x128xf32>
    %c0_9 = arith.constant 0 : index
    %c0_10 = arith.constant 0 : index
    %7 = vector.load %arg6[%c0_9, %c0_10] : memref<1x128xf32, #tpu.memory_space<vmem>>, vector<1x128xf32>
    %c0_11 = arith.constant 0 : index
    %c0_12 = arith.constant 0 : index
    %8 = memref.load %arg7[%c0_11, %c0_12] : memref<1x1xf32, #tpu.memory_space<smem>>
    %9 = vector.broadcast %4 : vector<1x256xf32> to vector<16x256xf32>
    %10 = arith.addf %3, %9 : vector<16x256xf32>
    %cst_13 = arith.constant 0.000000e+00 : f32
    %11 = vector.broadcast %cst_13 : f32 to vector<16x256xf32>
    %12 = arith.maximumf %10, %11 : vector<16x256xf32>
    %13 = arith.truncf %12 : vector<16x256xf32> to vector<16x256xbf16>
    %cst_14 = arith.constant dense<0.000000e+00> : vector<16x128xf32>
    %14 = tpu.matmul %13, %5, %cst_14 {dimension_numbers = #tpu.dot_dimension_numbers<[1], [0], [0], [1], [0, 0, 1, 1], [], []>} : vector<16x256xbf16>, vector<256x128xbf16>, vector<16x128xf32> -> vector<16x128xf32>
    %15 = vector.broadcast %6 : vector<1x128xf32> to vector<16x128xf32>
    %16 = arith.addf %14, %15 : vector<16x128xf32>
    %cst_15 = arith.constant 0.000000e+00 : f32
    %17 = vector.broadcast %cst_15 : f32 to vector<16x128xf32>
    %18 = arith.maximumf %16, %17 : vector<16x128xf32>
    %19 = vector.broadcast %7 : vector<1x128xf32> to vector<16x128xf32>
    %20 = arith.mulf %18, %19 : vector<16x128xf32>
    %cst_16 = arith.constant dense<0.000000e+00> : vector<16xf32>
    %21 = vector.multi_reduction <add>, %20, %cst_16 [1] : vector<16x128xf32> to vector<16xf32>
    %22 = vector.shape_cast %21 : vector<16xf32> to vector<16x1xf32>
    %23 = vector.broadcast %8 : f32 to vector<16x1xf32>
    %24 = arith.addf %22, %23 : vector<16x1xf32>
    %c0_17 = arith.constant 0 : index
    %c0_18 = arith.constant 0 : index
    %25 = vector.load %arg8[%c0_17, %c0_18] : memref<16x1xf32, #tpu.memory_space<vmem>>, vector<16x1xf32>
    tpu.vector_store %arg8[%c0_17, %c0_18], %24 {strides = array<i32>} : memref<16x1xf32, #tpu.memory_space<vmem>>, vector<16x1xf32>,
    return
  }
  func.func @transform_0(%arg0: i32) -> (i32, i32) {
    %c0_i32 = arith.constant 0 : i32
    %c0_i32_0 = arith.constant 0 : i32
    return %arg0, %c0_i32 : i32, i32
  }
  func.func @transform_1(%arg0: i32) -> (i32, i32) {
    %c0_i32 = arith.constant 0 : i32
    %c0_i32_0 = arith.constant 0 : i32
    %c0_i32_1 = arith.constant 0 : i32
    return %c0_i32, %c0_i32_0 : i32, i32
  }
  func.func @transform_2(%arg0: i32) -> (i32, i32) {
    %c0_i32 = arith.constant 0 : i32
    %c0_i32_0 = arith.constant 0 : i32
    %c0_i32_1 = arith.constant 0 : i32
    return %c0_i32, %c0_i32_0 : i32, i32
  }
  func.func @transform_3(%arg0: i32) -> (i32, i32) {
    %c0_i32 = arith.constant 0 : i32
    %c0_i32_0 = arith.constant 0 : i32
    %c0_i32_1 = arith.constant 0 : i32
    return %c0_i32, %c0_i32_0 : i32, i32
  }
  func.func @transform_4(%arg0: i32) -> (i32, i32) {
    %c0_i32 = arith.constant 0 : i32
    %c0_i32_0 = arith.constant 0 : i32
    %c0_i32_1 = arith.constant 0 : i32
    return %c0_i32, %c0_i32_0 : i32, i32
  }
  func.func @transform_5(%arg0: i32) -> (i32, i32) {
    %c0_i32 = arith.constant 0 : i32
    %c0_i32_0 = arith.constant 0 : i32
    %c0_i32_1 = arith.constant 0 : i32
    return %c0_i32, %c0_i32_0 : i32, i32
  }
  func.func @transform_6(%arg0: i32) -> (i32, i32) {
    %c0_i32 = arith.constant 0 : i32
    %c0_i32_0 = arith.constant 0 : i32
    %c0_i32_1 = arith.constant 0 : i32
    return %c0_i32, %c0_i32_0 : i32, i32
  }
  func.func @transform_7(%arg0: i32) -> (i32, i32) {
    %c0_i32 = arith.constant 0 : i32
    %c0_i32_0 = arith.constant 0 : i32
    return %arg0, %c0_i32 : i32, i32
  }
}

</mosaic_0001>

<bundles_post_ra>
// kernel: tpu_custom_call.1
= control target key start
LH: loop header
LB: loop body
LE: loop exit
PB: predicated region body
PF: predicated region fallthrough
CT: control target
= control target key end

     0   :  { %13 = vsyncpa [#allocation4], 0  ;;  %s619_s0 = inlined_call_operand.hbm [shape: f32[16,32], index: 0, kind: input, shape index: {}]   ;;  %s620_s1 = inlined_call_operand.hbm [shape: bf16[32,256], index: 1, kind: input, shape index: {}]   ;;  %s621_s2 = inlined_call_operand.vmem [shape: f32[1,256], index: 2, kind: input, shape index: {}]   ;;  %s622_s3 = inlined_call_operand.hbm [shape: bf16[256,128], index: 3, kind: input, shape index: {}]   ;;  %s623_s4 = inlined_call_operand.vmem [shape: f32[1,128], index: 4, kind: input, shape index: {}]   ;;  %s624_s5 = inlined_call_operand.vmem [shape: f32[1,128], index: 5, kind: input, shape index: {}]   ;;  %s625_s6 = inlined_call_operand.<no memory space> [shape: f32[1,1], index: 6, kind: input, shape index: {}]   ;;  %s626_s7 = inlined_call_operand.vmem [shape: f32[16,1], index: 7, kind: output, shape index: {}]  }
   0x1   :  { %14 = vsyncpa [#allocation6], 0  ;;  %s510_s24 = smov [#allocation5]   ;;  %s511_s26 = smov [#allocation3]  }
   0x2   :  { %s32_s25 = sshll.u32 %s510_s24, 4  ;;  %s20_s27 = sshll.u32 %s511_s26, 4  ;;  %s33_s25 = int_to_ptr.vmem [resolvable:$true] %s32_s25  ;;  %s558_s27 = int_to_ptr.vmem [resolvable:$true] %s20_s27 }
   0x3   :  { %s440_s30 = scalar_lea.hbm %s620_s1, 512 }
   0x4   :  { %p441_p0 = scmp.ne.s32.totalorder %s620_s1, %s440_s30  ;;  %p444_p1 = scmp.lt.u32.totalorder %s440_s30, %s620_s1 }
   0x6   :  { %p446_p2 = pnand %p444_p1, %p441_p0 }
   0x8   :  { %449 = shalt.err (!%p446_p2)
}
   0x9   :  { %s450_s12 = scalar_lea.vmem %s33_s25, 512  ;;  %p455_p4 = scmp.lt.s32.totalorder %s33_s25, %s33_s25 }
   0xa   :  { %p451_p3 = scmp.ne.s32.totalorder %s33_s25, %s450_s12  ;;  %p456_p5 = scmp.lt.s32.totalorder %s450_s12, %s450_s12 }
   0xc   :  { %p457_p6 = por %p456_p5, %p455_p4 }
   0xe   :  { %p458_p7 = pnand %p457_p6, %p451_p3 }
  0x10   :  { %461 = shalt.err (!%p458_p7)
}
  0x11   :  { %s512_s13 = smov 128   ;;  %s513_s14 = smov 8  }
  0x12   :  { %38 = dma.hbm_to_vmem [thread:$0]  %s620_s1, 512, %s33_s25, [#allocation6], %s512_s13, %s512_s13, %s513_s14  }
  0x13   :  { %s462_s19 = scalar_lea.hbm %s619_s0, 256 }
  0x14   :  { %p463_p8 = scmp.ne.s32.totalorder %s619_s0, %s462_s19  ;;  %p466_p9 = scmp.lt.u32.totalorder %s462_s19, %s619_s0 }
  0x16   :  { %p468_p10 = pnand %p466_p9, %p463_p8 }
  0x18   :  { %471 = shalt.err (!%p468_p10)
}
  0x19   :  { %s472_s24 = scalar_lea.vmem %s558_s27, 256  ;;  %p477_p12 = scmp.lt.s32.totalorder %s558_s27, %s558_s27 }
  0x1a   :  { %p473_p11 = scmp.ne.s32.totalorder %s558_s27, %s472_s24  ;;  %p478_p13 = scmp.lt.s32.totalorder %s472_s24, %s472_s24 }
  0x1c   :  { %p479_p0 = por %p478_p13, %p477_p12 }
  0x1e   :  { %p480_p1 = pnand %p479_p0, %p473_p11 }
  0x20   :  { %483 = shalt.err (!%p480_p1)
}
  0x21   :  { %26 = dma.hbm_to_vmem [thread:$0]  %s619_s0, 256, %s558_s27, [#allocation4], %s512_s13, %s512_s13, %s513_s14  }
  0x22   :  { %s514_s26 = smov [#allocation7]   ;;  %s484_s8 = scalar_lea.hbm %s622_s3, 2048 }
  0x23   :  { %s46_s28 = sshll.u32 %s514_s26, 4  ;;  %p485_p2 = scmp.ne.s32.totalorder %s622_s3, %s484_s8  ;;  %s47_s28 = int_to_ptr.vmem [resolvable:$true] %s46_s28 }
  0x24   :  { %p488_p3 = scmp.lt.u32.totalorder %s484_s8, %s622_s3 }
  0x26   :  { %p490_p4 = pnand %p488_p3, %p485_p2 }
  0x28   :  { %493 = shalt.err (!%p490_p4)
}
  0x29   :  { %s494_s15 = scalar_lea.vmem %s47_s28, 2048  ;;  %p499_p6 = scmp.lt.s32.totalorder %s47_s28, %s47_s28 }
  0x2a   :  { %p495_p5 = scmp.ne.s32.totalorder %s47_s28, %s494_s15  ;;  %p500_p7 = scmp.lt.s32.totalorder %s494_s15, %s494_s15 }
  0x2c   :  { %p501_p8 = por %p500_p7, %p499_p6 }
  0x2e   :  { %p502_p9 = pnand %p501_p8, %p495_p5 }
  0x30   :  { %505 = shalt.err (!%p502_p9)
}
  0x31   :  { %s515_s0 = smov 64   ;;  %s516_s27 = smov 4  }
  0x32   :  { %52 = dma.hbm_to_vmem [thread:$0]  %s622_s3, 2048, %s47_s28, [#allocation6], %s515_s0, %s515_s0, %s516_s27  }
  0x33   :  { %506 = dma.done.wait [#allocation4], 256  }
  0x34   :  { %507 = vsyncadd [#allocation4], 4294967040 }
  0x35   :  { %508 = dma.done.wait [#allocation6], 2560  }
  0x36   :  { %509 = vsyncadd [#allocation6], 4294964736  ;;  %v517_v0 = vmov 0   ;;  %v418_v1 = vld [vmem:[#allocation5 + $0x4] ss:$8 sps:$4 sm:$0xff]   ;;  %v69_v5 = vld [vmem:[#allocation3] sm:$0xff]  ;;  %v113_v24 = vlaneseq  ;;  %v353_v59 = vstv %s625_s6 }
  0x37   :  { %179 = vmatprep.mubr.bf16.mxu0 %v517_v0  ;;  %v420_v2 = vld [vmem:[#allocation5] ss:$8 sps:$4 sm:$0xff]   ;;  %147 = vmatprep.subr.bf16.mxu0 %v418_v1  ;;  %v421_v3 = vld [vmem:[#allocation5 + $0x14] ss:$8 sps:$4 sm:$0xff]   ;;  %v423_v4 = vld [vmem:[#allocation5 + $0x10] ss:$8 sps:$4 sm:$0xff]  }
  0x38   :  { %148 = vmatpush1.bf16.msra.mxu0 %v420_v2  ;;  %v70_v6 = vld [vmem:[#allocation3 + $0x8] sm:$0xff]  ;;  %v424_v7 = vld [vmem:[#allocation7 + $0x40] sm:$0xff]   ;;  %v426_v10 = vld [vmem:[#allocation7 + $0x48] sm:$0xff]   ;;  %vm143_vm0 = vcmask 261120   ;;  %v114_v25 = vshrl.u32 %v113_v24, 7  ;;  %vm356_vm1 = vcmask 7168  }
  0x39   :  { %149 = vmatprep.subr.bf16.mxu0 %v421_v3  ;;  %v425_v8 = vld [vmem:[#allocation7] sm:$0xff]   ;;  %v71_v9 = vpack.c.bf16 %v70_v6, %v69_v5  ;;  %388 = vmatprep.subr.bf16.mxu1 %v424_v7  ;;  %v427_v11 = vld [vmem:[#allocation7 + $0x8] sm:$0xff]   ;;  %v428_v12 = vld [vmem:[#allocation7 + $0x50] sm:$0xff]  }
  0x3a   :  { %389 = vmatpush3.bf16.msra.mxu1 %v425_v8  ;;  %v429_v13 = vld [vmem:[#allocation7 + $0x10] sm:$0xff]   ;;  %v430_v14 = vld [vmem:[#allocation7 + $0x58] sm:$0xff]   ;;  %v432_v16 = vld [vmem:[#allocation7 + $0x60] sm:$0xff]   ;;  %v115_v26 = vsub.s32 0, %v114_v25  ;;  %v119_v28 = vsub.s32 1, %v114_v25 }
  0x3b   :  { %390 = vmatprep.subr.bf16.mxu1 %v426_v10  ;;  %v431_v15 = vld [vmem:[#allocation7 + $0x18] sm:$0xff]   ;;  %v433_v17 = vld [vmem:[#allocation7 + $0x20] sm:$0xff]   ;;  %v434_v18 = vld [vmem:[#allocation7 + $0x68] sm:$0xff]  }
  0x3c   :  { %150 = vmatpush1.bf16.msra.mxu0 %v423_v4  ;;  %v435_v19 = vld [vmem:[#allocation7 + $0x28] sm:$0xff]   ;;  %v436_v20 = vld [vmem:[#allocation7 + $0x70] sm:$0xff]   ;;  %v438_v22 = vld [vmem:[#allocation7 + $0x78] sm:$0xff]  }
  0x3d   :  { %v437_v21 = vld [vmem:[#allocation7 + $0x30] sm:$0xff]   ;;  %v439_v23 = vld [vmem:[#allocation7 + $0x38] sm:$0xff]  }
  0x3e   :  { %391 = vmatpush3.bf16.msra.mxu1 %v427_v11  ;;  %v76_v27 = vld [vmem:[%s621_s2] sm:$0x3] }
  0x3f   :  { %369 = vmatmul.mubr.msk.bf16.vlgmr.msra.gmra.mrb[0].mxu0 %vm143_vm0, %v71_v9  ;;  %392 = vmatprep.subr.bf16.mxu1 %v428_v12  ;;  %v116_v29 = vrot.slane %v76_v27, %v115_v26  ;;  %v120_v30 = vrot.slane %v76_v27, %v119_v28  ;;  %v370_v47 = vld [vmem:[%s623_s4] ss:$0 sm:$0xff] }
  0x40   :  { %v387_v53 = vld [vmem:[%s624_s5] ss:$0 sm:$0xff] }
  0x42   :  { %393 = vmatpush3.bf16.msra.mxu1 %v429_v13 }
  0x43   :  { %394 = vmatprep.subr.bf16.mxu1 %v430_v14 }
  0x46   :  { %395 = vmatpush3.bf16.msra.mxu1 %v431_v15 }
  0x47   :  { %396 = vmatprep.subr.bf16.mxu1 %v432_v16 }
  0x4a   :  { %397 = vmatpush3.bf16.msra.mxu1 %v433_v17 }
  0x4b   :  { %398 = vmatprep.subr.bf16.mxu1 %v434_v18 }
  0x4e   :  { %399 = vmatpush3.bf16.msra.mxu1 %v435_v19 }
  0x4f   :  { %400 = vmatprep.subr.bf16.mxu1 %v436_v20 }
  0x52   :  { %401 = vmatpush3.bf16.msra.mxu1 %v437_v21 }
  0x53   :  { %402 = vmatprep.subr.bf16.mxu1 %v438_v22 }
  0x56   :  { %403 = vmatpush3.bf16.msra.mxu1 %v439_v23 }
 0x112   :  { %v181_v31 = vpop.f32.mrb[0].mxu0 }
 0x113   :  { %v182_v32 = vadd.f32 %v181_v31, %v116_v29  ;;  %v183_v33 = vpop.f32.mrb[1].mxu0 }
 0x114   :  { %v184_v34 = vadd.f32 %v183_v33, %v120_v30  ;;  %v185_v35 = vpop.f32.mrb[2].mxu0 }
 0x115   :  { %v186_v36 = vadd.f32 %v185_v35, %v116_v29  ;;  %v187_v37 = vpop.f32.mrb[3].mxu0  ;;  %v190_v39 = vmax.f32 %v182_v32, 0.0 }
 0x116   :  { %v188_v38 = vadd.f32 %v187_v37, %v120_v30  ;;  %v191_v41 = vmax.f32 %v184_v34, 0.0 }
 0x117   :  { %v192_v40 = vmax.f32 %v186_v36, 0.0 }
 0x118   :  { %v193_v42 = vmax.f32 %v188_v38, 0.0 }
 0x119   :  { %v194_v43 = vpack.c.bf16 %v192_v40, %v190_v39 }
 0x11a   :  { %v195_v44 = vpack.c.bf16 %v193_v42, %v191_v41 }
 0x11c   :  { %330 = vmatprep.mubr.bf16.mxu1 %v195_v44 }
 0x11d   :  { %331 = vmatmul.mubr.bf16.vlgmr.msra.gmra.mrb[0].mxu1 %v194_v43 }
 0x1f0   :  { %v404_v45 = vpop.f32.mrb[0].mxu1 }
 0x1f1   :  { %v405_v46 = vpop.f32.mrb[1].mxu1 }
 0x1f2   :  { %v406_v48 = vadd.f32 %v405_v46, %v404_v45  ;;  %v407_v49 = vpop.f32.mrb[2].mxu1 }
 0x1f3   :  { %v408_v50 = vpop.f32.mrb[3].mxu1 }
 0x1f4   :  { %v409_v51 = vadd.f32 %v408_v50, %v407_v49  ;;  %v333_v52 = vadd.f32 %v406_v48, %v370_v47 }
 0x1f6   :  { %v336_v54 = vadd.f32 %v409_v51, %v370_v47  ;;  %v339_v55 = vmax.f32 %v333_v52, 0.0 }
 0x1f8   :  { %v340_v56 = vmax.f32 %v336_v54, 0.0  ;;  %v347_v57 = vmul.f32 %v387_v53, %v339_v55 }
 0x1fa   :  { %349 = vadd.xlane.f32.xlu0 %v347_v57  ;;  %v348_v58 = vmul.f32 %v387_v53, %v340_v56 }
 0x1fe   :  { %351 = vadd.xlane.f32.xlu0 %v348_v58 }
 0x287   :  { %v350_v60 = vpop.xlane.xlu0 %349 }
 0x288   :  { %v354_v61 = vadd.f32 %v353_v59, %v350_v60 }
 0x28a   :  { %357 = vst.msk [vmem:[%s626_s7] sm:$0xff] %vm356_vm1, %v354_v61 }
 0x28b   :  { %v352_v62 = vpop.xlane.xlu0 %351 }
 0x28c   :  { %v355_v63 = vadd.f32 %v353_v59, %v352_v62 }
 0x28e   :  { %358 = vst.msk [vmem:[%s626_s7 + $0x8] sm:$0xff] %vm356_vm1, %v355_v63 }
 0x28f   :  { %363 = vsyncpa [#allocation4], 1 }
 0x290   :  { %364 = vsyncpa [#allocation6], 1 }

</bundles_post_ra>
